<compile_context>
chip_gen: v7x
topology: tpu7x:2x2x1
jax: 0.10.0
libtpu: 0.0.40
codegen_flags: <defaults>
</compile_context>

<pallas_src>
import functools

import jax
import jax.numpy as jnp
from jax import lax
from jax.experimental import pallas as pl
from jax.experimental.pallas import tpu as pltpu


def d_block_kernel(w_ref, b_ref, cols_ref, o_ref, *, alpha):
    """Fused conv-as-matmul + folded BN + LeakyReLU for one (batch, spatial-tile) step.

    w_ref:    VMEM (Cout, 9*Cin)     f32  conv weights with BN scale pre-folded
    b_ref:    VMEM (Cout, 1)         f32  folded BN bias
    cols_ref: VMEM (1, 9*Cin, Mtile)      im2col tap-matrix tile (lane-dense minor dim)
    o_ref:    VMEM (1, Cout, Mtile)       output tile (lane-dense minor dim)
    """
    acc = jnp.dot(w_ref[...], cols_ref[0],
                  preferred_element_type=jnp.float32)   # MXU: (Cout, Mtile)
    y = acc + b_ref[...]                                # per-channel bias, lane broadcast
    y = jnp.where(y >= 0, y, alpha * y)                 # LeakyReLU (valid for any alpha)
    o_ref[0] = y.astype(o_ref.dtype)


def d_block_forward(x, conv_w, bn_gamma, bn_beta, bn_mean, bn_var, *, alpha=0.2, eps=1e-5):
    """LeakyReLU(BatchNorm(Conv2d(x, 3x3, stride=2, pad=1, bias=False))) in NCHW."""
    N, Cin, H, W = x.shape
    Cout = conv_w.shape[0]
    assert conv_w.shape == (Cout, Cin, 3, 3), "kernel_size=3 only"

    Ho = (H + 2 - 3) // 2 + 1
    Wo = (W + 2 - 3) // 2 + 1
    M = Ho * Wo
    Mpad = ((M + 127) // 128) * 128          # lane-dense minor dim (multiple of 128)

    # ---- im2col: 9 shifted stride-2 views of the zero-padded input (one XLA pass) ----
    xp = jnp.pad(x.astype(jnp.float32), ((0, 0), (0, 0), (1, 1), (1, 1)))
    taps = []
    for kh in range(3):
        for kw in range(3):
            taps.append(lax.slice(
                xp, (0, 0, kh, kw),
                (N, Cin, kh + 2 * (Ho - 1) + 1, kw + 2 * (Wo - 1) + 1),
                (1, 1, 2, 2)))                                   # (N, Cin, Ho, Wo)
    cols = jnp.stack(taps, axis=2).reshape(N, Cin * 9, M)        # K index = ci*9 + kh*3 + kw
    cols = jnp.pad(cols, ((0, 0), (0, 0), (0, Mpad - M)))        # pad spatial to 128-dense

    # ---- fold inference BatchNorm: scale into the weights, bias into the epilogue ----
    scale = bn_gamma / jnp.sqrt(bn_var + eps)
    w2 = (conv_w.reshape(Cout, Cin * 9) * scale[:, None]).astype(jnp.float32)
    bias = (bn_beta - bn_mean * scale).astype(jnp.float32).reshape(Cout, 1)

    # Spatial tile on the lane axis: biggest power-of-two multiple of 128 dividing Mpad.
    Mtile = 128
    for t in (2048, 1024, 512, 256):
        if Mpad % t == 0:
            Mtile = t
            break

    K = Cin * 9
    kernel = functools.partial(d_block_kernel, alpha=alpha)

    out = pl.pallas_call(
        kernel,
        out_shape=jax.ShapeDtypeStruct((N, Cout, Mpad), x.dtype),
        grid=(N, Mpad // Mtile),
        in_specs=[
            pl.BlockSpec((Cout, K), lambda n, m: (0, 0)),          # weights, VMEM-resident
            pl.BlockSpec((Cout, 1), lambda n, m: (0, 0)),          # folded BN bias
            pl.BlockSpec((1, K, Mtile), lambda n, m: (n, 0, m)),   # im2col tile
        ],
        out_specs=pl.BlockSpec((1, Cout, Mtile), lambda n, m: (n, 0, m)),
        compiler_params=pltpu.CompilerParams(
            dimension_semantics=("parallel", "parallel")),
    )(w2, bias, cols)

    return out[:, :, :M].reshape(N, Cout, Ho, Wo)


def _reference(x, conv_w, gamma, beta, mean, var, *, alpha=0.2, eps=1e-5):
    y = lax.conv_general_dilated(
        x, conv_w, window_strides=(2, 2), padding=((1, 1), (1, 1)),
        dimension_numbers=("NCHW", "OIHW", "NCHW"),
        precision=lax.Precision.HIGHEST)
    scale = gamma / jnp.sqrt(var + eps)
    y = y * scale[None, :, None, None] + (beta - mean * scale)[None, :, None, None]
    return jnp.where(y >= 0, y, alpha * y)


if __name__ == "__main__":
    key = jax.random.PRNGKey(0)
    ks = jax.random.split(key, 6)

    N, Cin, H, W = 2, 4, 16, 16
    Cout = 32

    x = jax.random.normal(ks[0], (N, Cin, H, W), dtype=jnp.float32)

    fan_in = Cin * 3 * 3
    bound = 1.0 / (fan_in ** 0.5)
    conv_w = jax.random.uniform(ks[1], (Cout, Cin, 3, 3), jnp.float32, -bound, bound)

    bn_gamma = jax.random.uniform(ks[2], (Cout,), jnp.float32, 0.5, 1.5)
    bn_beta = 0.1 * jax.random.normal(ks[3], (Cout,), dtype=jnp.float32)
    bn_mean = 0.1 * jax.random.normal(ks[4], (Cout,), dtype=jnp.float32)
    bn_var = jax.random.uniform(ks[5], (Cout,), jnp.float32, 0.5, 1.5)

    out = d_block_forward(x, conv_w, bn_gamma, bn_beta, bn_mean, bn_var)
    out = jax.block_until_ready(out)

    ref = _reference(x, conv_w, bn_gamma, bn_beta, bn_mean, bn_var)
    assert out.shape == (N, Cout, 8, 8), out.shape
    # MXU f32 matmul (default precision) may run bf16 passes; allow a small slack.
    err = float(jnp.max(jnp.abs(out - ref)))
    assert jnp.allclose(out, ref, atol=3e-2, rtol=2e-2), err

    print("KERNEL_OK")
</pallas_src>

<mosaic_0001>
module attributes {stable_mosaic.version = 11 : i64} {
  func.func @d_block_kernel(%arg0: i32, %arg1: i32, %arg2: memref<32x36xf32, #tpu.memory_space<vmem>>, %arg3: memref<32x1xf32, #tpu.memory_space<vmem>>, %arg4: memref<1x36x128xf32, #tpu.memory_space<vmem>>, %arg5: memref<1x32x128xf32, #tpu.memory_space<vmem>>) attributes {dimension_semantics = [#tpu.dimension_semantics<parallel>, #tpu.dimension_semantics<parallel>], iteration_bounds = array<i64: 2, 1>, scalar_prefetch = 0 : i64, scratch_operands = 0 : i64, tpu.core_type = #tpu.core_type<tc>, window_params = [{pipeline_mode = #tpu.pipeline_mode<synchronous>, transform_indices = @transform_0, window_bounds = array<i64: 32, 36>}, {pipeline_mode = #tpu.pipeline_mode<synchronous>, transform_indices = @transform_1, window_bounds = array<i64: 32, 1>}, {transform_indices = @transform_2, window_bounds = array<i64: 1, 36, 128>}, {transform_indices = @transform_3, window_bounds = array<i64: 1, 32, 128>}]} {
    %c0 = arith.constant 0 : index
    %c0_0 = arith.constant 0 : index
    %0 = vector.load %arg2[%c0, %c0_0] : memref<32x36xf32, #tpu.memory_space<vmem>>, vector<32x36xf32>
    %c0_1 = arith.constant 0 : index
    %c0_2 = arith.constant 0 : index
    %c0_3 = arith.constant 0 : index
    %1 = vector.load %arg4[%c0_1, %c0_2, %c0_3] : memref<1x36x128xf32, #tpu.memory_space<vmem>>, vector<1x36x128xf32>
    %2 = vector.shape_cast %1 : vector<1x36x128xf32> to vector<36x128xf32>
    %cst = arith.constant dense<0.000000e+00> : vector<32x128xf32>
    %3 = tpu.matmul %0, %2, %cst {dimension_numbers = #tpu.dot_dimension_numbers<[1], [0], [0], [1], [0, 0, 1, 1], [], []>} : vector<32x36xf32>, vector<36x128xf32>, vector<32x128xf32> -> vector<32x128xf32>
    %c0_4 = arith.constant 0 : index
    %c0_5 = arith.constant 0 : index
    %4 = vector.load %arg3[%c0_4, %c0_5] : memref<32x1xf32, #tpu.memory_space<vmem>>, vector<32x1xf32>
    %5 = vector.broadcast %4 : vector<32x1xf32> to vector<32x128xf32>
    %6 = arith.addf %3, %5 : vector<32x128xf32>
    %cst_6 = arith.constant 0.000000e+00 : f32
    %7 = vector.broadcast %cst_6 : f32 to vector<32x128xf32>
    %8 = arith.cmpf oge, %6, %7 : vector<32x128xf32>
    %cst_7 = arith.constant 2.000000e-01 : f32
    %9 = vector.broadcast %cst_7 : f32 to vector<32x128xf32>
    %10 = arith.mulf %9, %6 : vector<32x128xf32>
    %11 = arith.select %8, %6, %10 : vector<32x128xi1>, vector<32x128xf32>
    %c0_8 = arith.constant 0 : index
    %c0_9 = arith.constant 0 : index
    %c0_10 = arith.constant 0 : index
    %12 = vector.load %arg5[%c0_8, %c0_9, %c0_10] : memref<1x32x128xf32, #tpu.memory_space<vmem>>, vector<1x32x128xf32>
    %13 = vector.shape_cast %12 : vector<1x32x128xf32> to vector<32x128xf32>
    %14 = vector.shape_cast %11 : vector<32x128xf32> to vector<1x32x128xf32>
    tpu.vector_store %arg5[%c0_8, %c0_9, %c0_10], %14 {strides = array<i32>} : memref<1x32x128xf32, #tpu.memory_space<vmem>>, vector<1x32x128xf32>,
    return
  }
  func.func @transform_0(%arg0: i32, %arg1: i32) -> (i32, i32) {
    %c0_i32 = arith.constant 0 : i32
    %c0_i32_0 = arith.constant 0 : i32
    %c0_i32_1 = arith.constant 0 : i32
    return %c0_i32, %c0_i32_0 : i32, i32
  }
  func.func @transform_1(%arg0: i32, %arg1: i32) -> (i32, i32) {
    %c0_i32 = arith.constant 0 : i32
    %c0_i32_0 = arith.constant 0 : i32
    %c0_i32_1 = arith.constant 0 : i32
    return %c0_i32, %c0_i32_0 : i32, i32
  }
  func.func @transform_2(%arg0: i32, %arg1: i32) -> (i32, i32, i32) {
    %c0_i32 = arith.constant 0 : i32
    %c0_i32_0 = arith.constant 0 : i32
    return %arg0, %c0_i32, %arg1 : i32, i32, i32
  }
  func.func @transform_3(%arg0: i32, %arg1: i32) -> (i32, i32, i32) {
    %c0_i32 = arith.constant 0 : i32
    %c0_i32_0 = arith.constant 0 : i32
    return %arg0, %c0_i32, %arg1 : i32, i32, i32
  }
}

</mosaic_0001>

<bundles_post_ra>
// kernel: tpu_custom_call.1
= control target key start
LH: loop header
LB: loop body
LE: loop exit
PB: predicated region body
PF: predicated region fallthrough
CT: control target
= control target key end

     0   :  { %8 = vsyncpa [#allocation3], 0  ;;  %s807_s0 = inlined_call_operand.vmem [shape: f32[32,36], index: 0, kind: input, shape index: {}]   ;;  %s808_s1 = inlined_call_operand.vmem [shape: f32[32,1], index: 1, kind: input, shape index: {}]   ;;  %s809_s2 = inlined_call_operand.vmem [shape: f32[2,36,128], index: 2, kind: input, shape index: {}]   ;;  %s810_s3 = inlined_call_operand.hbm [shape: f32[2,32,128], index: 3, kind: output, shape index: {}]  }
   0x1   :  { %10 = vsyncpa [#allocation3 + $0x1], 0  ;;  %s660_s12 = smov 0   ;;  %s662_s13 = smov 0  }
   0x2   :  { %s664_s14 = smov 0   ;;  %s666_s15 = smov 0  }
   0x3   :  { %s668_s16 = smov 0   ;;  %s670_s17 = smov 0  }
   0x4 LB: > { %s438_s18 = sadd.s32 4294967295, %s634_s17   ;;  %s439_s19 = sadd.s32 4294967294, %s634_s17   ;;  %s634_s17 = sphi %s670_s17, %s16_s17   ;;  %s630_s16 = sphi %s668_s16, %s817_s16   ;;  %s626_s15 = sphi %s666_s15, %s816_s15   ;;  %s622_s14 = sphi %s664_s14, %s815_s14   ;;  %s618_s13 = sphi %s662_s13, %s814_s13   ;;  %s614_s12 = sphi %s660_s12, %s813_s12  }
   0x5   : > { %s28_s20 = sadd.s32 1, %s630_s16  ;;  %s107_s21 = sadd.s32 1, %s622_s14 }
   0x6   : > { %p30_p0 = scmp.ge.s32.totalorder %s28_s20, 2  ;;  %p117_p1 = scmp.ne.s32.totalorder %s622_s14, %s618_s13 }
   0x7   : > { %p118_p2 = scmp.eq.s32.totalorder %s438_s18, 1  ;;  %p123_p3 = scmp.ne.s32.totalorder %s618_s13, %s614_s12 }
   0x8   : > { %s819_s20 = smov (%p30_p0, %s28_s20), 0  ;;  %p124_p5 = scmp.eq.s32.totalorder %s439_s19, 1 }
   0x9   : > { %p700_p4 = por %p118_p2, %p117_p1  ;;  %s102_s23 = ssub.s32 %s630_s16, %s819_s20 }
   0xa   : > { %p442_p6 = scmp.ge.s32.totalorder %s634_s17, 1  ;;  %p105_p7 = scmp.eq.s32.totalorder %s102_s23, 0 }
   0xb   : > { %p707_p8 = por %p124_p5, %p123_p3  ;;  %p159_p9 = scmp.lt.s32.totalorder %s634_s17, 3 }
   0xc   : > { %s713_s25 = scalar_select %p105_p7, %s622_s14, %s107_s21  }
   0xd   : > { %p160_p10 = pnand %p442_p6, %p159_p9 }
   0xe   : > { %p186_p11 = scmp.lt.s32.totalorder (!%p160_p10), %s626_s15, 1  ;;  %v194_v0 = vld [vmem:[%s807_s0] sm:$0xff] (!%p160_p10)  ;;  %vm227_vm0 = vcmask (!%p160_p10), 293888   ;;  %v196_v1 = vld [vmem:[%s807_s0 + $0x10] sm:$0xff] (!%p160_p10)  ;;  %v636_v4 = vmov (!%p160_p10), 0   ;;  %v206_v5 = vld [vmem:[%s808_s1 + $0x18] sm:$0xff] (!%p160_p10) }
   0xf   : > { %163 = sbr.rel (%p160_p10) target bundleno = 273 (0x111), region = 32  ;;  %475 = vmatprep.mubr.msk.f32.mxu0 (!%p160_p10), %vm227_vm0, %v194_v0  ;;  %478 = vmatprep.mubr.msk.f32.mxu1 (!%p160_p10), %vm227_vm0, %v196_v1  ;;  %v205_v2 = vld [vmem:[%s808_s1 + $0x10] sm:$0xff] (!%p160_p10)  ;;  %v203_v3 = vld [vmem:[%s808_s1] sm:$0xff] (!%p160_p10)  ;;  %v204_v6 = vld [vmem:[%s808_s1 + $0x8] sm:$0xff] (!%p160_p10)  ;;  %vm240_vm1 = vcmask (!%p160_p10), 1043456   ;;  %s183_s30 = sand.u32 (!%p160_p10), 1, %s618_s13  }
  0x10   : > { %555 = vset.pattern.permute.xlu1 (!%p160_p10), %v636_v4  ;;  %554 = vset.pattern.permute.xlu0 (!%p160_p10), %v636_v4  ;;  %v195_v14 = vld [vmem:[%s807_s0 + $0x8] sm:$0xff] (!%p160_p10)  ;;  %v197_v15 = vld [vmem:[%s807_s0 + $0x18] sm:$0xff] (!%p160_p10)  ;;  %s443_s4 = sshll.u32 (!%p160_p10), %s183_s30, 5  ;;  %s761_s10 = scalar_lea.sflag (!%p160_p10), [#allocation3], %s183_s30 }
  0x11   : > { %219 = vperm.xlu1 (!%p160_p10), %555, %v205_v2   ;;  %209 = vperm.xlu0 (!%p160_p10), %554, %v203_v3   ;;  %s185_s5 = scalar_lea.vmem (!%p160_p10), [#allocation2], %s443_s4  ;;  %s637_s18 = smov (!%p160_p10), [#allocation2]  }
  0x12   : > { %s360_s6 = sshll.u32 (!%p160_p10), %s185_s5, 4  ;;  %s560_s19 = sshll.u32 (!%p160_p10), %s637_s18, 4  ;;  %s752_s6 = int_to_ptr.vmem [resolvable:$true] %s360_s6  ;;  %s561_s19 = int_to_ptr.vmem [resolvable:$false] %s560_s19 }
  0x13   : > { %s556_s11 = scalar_lea.vmem (!%p160_p10), %s752_s6, 512  ;;  %s562_s21 = scalar_lea.vmem (!%p160_p10), %s561_s19, 1024 }
  0x14   : > { %p557_p12 = scmp.ne.s32.totalorder (!%p160_p10), %s752_s6, %s556_s11  ;;  %p563_p1 = scmp.lt.s32.totalorder (!%p160_p10), %s752_s6, %s561_s19 }
  0x15   : > { %224 = vperm.xlu1 (!%p160_p10), %555, %v206_v5   ;;  %214 = vperm.xlu0 (!%p160_p10), %554, %v204_v6   ;;  %p564_p2 = scmp.lt.s32.totalorder (!%p160_p10), %s562_s21, %s556_s11 }
  0x16   : > { %s187_s7 = scalar_select %p186_p11, %s626_s15, 1 }
  0x17   : > { %p558_p13 = pnand %p557_p12, %p700_p4  ;;  %p565_p3 = por %p564_p2, %p563_p1 }
  0x18   : > { %s495_s8 = smul.u32 40, %s187_s7  ;;  %s455_s7 = sshll.u32 %s626_s15, 9 }
  0x19   : > { %s757_s15 = scalar_lea.hbm %s810_s3, %s455_s7  ;;  %p559_p0 = pneg %p558_p13 }
  0x1a   : > { %s193_s23 = scalar_lea.vmem %s809_s2, %s495_s8 }
  0x1b   : > { %v198_v7 = vld [vmem:[%s193_s23] sm:$0xff]  ;;  %v199_v8 = vld [vmem:[%s193_s23 + $0x8] sm:$0xff]  ;;  %v200_v9 = vld [vmem:[%s193_s23 + $0x10] sm:$0xff]  ;;  %p566_p5 = pnand %p565_p3, %p559_p0 }
  0x1c   : > { %v481_v10 = vpack.c.bf16 %v199_v8, %v198_v7  ;;  %v201_v11 = vld [vmem:[%s193_s23 + $0x18] sm:$0xff]  ;;  %v202_v13 = vld [vmem:[%s193_s23 + $0x20] sm:$0xf] }
  0x1d   : > { %v485_v12 = vpack.c.bf16 %v201_v11, %v200_v9 }
  0x1e   : > { %482 = vmatprep.subr.bf16.mxu0 %v481_v10  ;;  %489 = vmatprep.subr.bf16.mxu1 %v481_v10 }
  0x1f   : > { %484 = vmatpush3.bf16.msra.mxu0 %v481_v10  ;;  %492 = vmatpush3.bf16.msra.mxu1 %v481_v10 }
  0x20   : > { %486 = vmatprep.subr.bf16.mxu0 %v485_v12  ;;  %490 = vmatprep.subr.bf16.mxu1 %v485_v12 }
  0x23   : > { %488 = vmatpush3.bf16.msra.mxu0 %v485_v12  ;;  %493 = vmatpush3.bf16.msra.mxu1 %v485_v12 }
  0x24   : > { %473 = vmatprep.subr.msk.mxu0 %vm240_vm1, %v202_v13  ;;  %491 = vmatprep.subr.msk.mxu1 %vm240_vm1, %v202_v13 }
  0x27   : > { %474 = vmatpush3.msk.msra.mxu0 %vm240_vm1, %v202_v13  ;;  %494 = vmatpush3.msk.msra.mxu1 %vm240_vm1, %v202_v13 }
  0x28   : > { %476 = vmatmul.mubr.msk.f32.vlgmr.msra.gmra.mrb[0].mxu0 %vm227_vm0, %v195_v14  ;;  %479 = vmatmul.mubr.msk.f32.vlgmr.msra.gmra.mrb[0].mxu1 %vm227_vm0, %v197_v15 }
  0x90   : > { %v220_v16 = vpop.permute.xlu1 %219  ;;  %v210_v17 = vpop.permute.xlu0 %209 }
  0x94   : > { %v225_v18 = vpop.permute.xlu1 %224  ;;  %v215_v19 = vpop.permute.xlu0 %214 }
  0xfb   : > { %v477_v20 = vpop.f32.mrb[0].mxu0  ;;  %v480_v21 = vpop.f32.mrb[0].mxu1 }
  0xfc   : > { %v316_v22 = vadd.f32 %v477_v20, %v215_v19  ;;  %v326_v23 = vadd.f32 %v480_v21, %v225_v18  ;;  %v310_v24 = vpop.f32.mrb[1].mxu0  ;;  %v320_v25 = vpop.f32.mrb[1].mxu1 }
  0xfd   : > { %v311_v26 = vadd.f32 %v310_v24, %v210_v17  ;;  %v321_v27 = vadd.f32 %v320_v25, %v220_v16 }
  0xfe   : > { %vm330_vm2 = vcmp.ge.f32.partialorder %v316_v22, 0.0  ;;  %v334_v28 = vmul.f32 0.2, %v316_v22  ;;  %vm332_vm3 = vcmp.ge.f32.partialorder %v326_v23, 0.0  ;;  %v336_v29 = vmul.f32 0.2, %v326_v23 }
  0xff   : > { %vm329_vm4 = vcmp.ge.f32.partialorder %v311_v26, 0.0  ;;  %v333_v30 = vmul.f32 0.2, %v311_v26  ;;  %vm331_vm5 = vcmp.ge.f32.partialorder %v321_v27, 0.0  ;;  %v335_v31 = vmul.f32 0.2, %v321_v27 }
 0x100   : > { %v338_v32 = vsel %vm330_vm2, %v316_v22, %v334_v28  ;;  %v340_v33 = vsel %vm332_vm3, %v326_v23, %v336_v29 }
 0x101   : > { %342 = vst [vmem:[%s185_s5 + $0x8] sm:$0xff] %v338_v32  ;;  %344 = vst [vmem:[%s185_s5 + $0x18] sm:$0xff] %v340_v33  ;;  %v337_v34 = vsel %vm329_vm4, %v311_v26, %v333_v30  ;;  %v339_v35 = vsel %vm331_vm5, %v321_v27, %v335_v31 }
 0x102   : > { %341 = vst [vmem:[%s185_s5] sm:$0xff] %v337_v34  ;;  %343 = vst [vmem:[%s185_s5 + $0x10] sm:$0xff] %v339_v35 }
 0x103   : > { %569 = shalt.err (!%p566_p5)
}
 0x104   : > { %s570_s23 = scalar_lea.hbm %s757_s15, 512  ;;  %s574_s28 = scalar_lea.hbm %s810_s3, 1024 }
 0x105   : > { %p571_p6 = scmp.ne.s32.totalorder %s757_s15, %s570_s23  ;;  %p575_p10 = scmp.lt.u32.totalorder %s757_s15, %s810_s3 }
 0x106   : > { %p576_p11 = scmp.lt.u32.totalorder %s574_s28, %s570_s23  ;;  %p578_p13 = scmp.lt.u32.totalorder %s570_s23, %s757_s15 }
 0x107   : > { %p572_p7 = pnand %p571_p6, %p700_p4 }
 0x108   : > { %p577_p12 = por %p576_p11, %p575_p10 }
 0x109   : > { %p573_p9 = pneg %p572_p7 }
 0x10a   : > { %p579_p0 = por %p578_p13, %p577_p12 }
 0x10c   : > { %p580_p1 = pnand %p579_p0, %p573_p9 }
 0x10e   : > { %583 = shalt.err (!%p580_p1)
}
 0x10f   : > { %s638_s4 = smov 128   ;;  %s639_s5 = smov 8  }
 0x110   : > { %496 = dma.vmem_to_hbm [thread:$0]  (%p700_p4), %s752_s6, 512, %s757_s15, %s761_s10, %s638_s4, %s638_s4, %s639_s5  }
 0x111 PF: > { %p502_p2 = scmp.ge.s32.totalorder %s634_s17, 2  ;;  %s375_s7 = sand.u32 1, %s614_s12  }
 0x112   : > { %s376_s8 = scalar_lea.sflag [#allocation3], %s375_s7 }
 0x113   : > { %p499_p3 = pnand %p502_p2, %p707_p8 }
 0x115   : > { %609 = dma.done.wait (!%p499_p3), %s376_s8, 512  }
 0x116   : > { %611 = vsyncadd (!%p499_p3), %s376_s8, 4294966784  ;;  %s16_s17 = sadd.s32 1, %s634_s17   ;;  %s813_s12 = smov %s618_s13 }
 0x117   : > { %p13_p5 = scmp.ge.s32.totalorder %s16_s17, 4   ;;  %s814_s13 = smov %s622_s14 }
 0x118   : > { %s815_s14 = smov %s713_s25  ;;  %s816_s15 = smov %s630_s16 }
 0x119   : > { %s817_s16 = smov %s819_s20  ;;  %15 = sbr.rel (!%p13_p5) target bundleno = 4 (0x4), region = 67 }
 0x120   :  { %381 = vsyncpa [#allocation3], 1 }
 0x121   :  { %383 = vsyncpa [#allocation3 + $0x1], 1 }

</bundles_post_ra>
